<compile_context>
chip_gen: v7x
topology: tpu7x:2x2x1
jax: 0.10.0
libtpu: 0.0.40
codegen_flags: <defaults>
</compile_context>

<pallas_src>
import math

import jax
import jax.numpy as jnp
from jax.experimental import pallas as pl
from jax.experimental.pallas import tpu as pltpu


_AUG = 128  # width of the lane-aligned augmented block (p in lane 0, zeros elsewhere)


def _vmem_capacity_bytes(default=64 * 1024 * 1024):
    try:
        info = pltpu.get_tpu_info()
        return int(getattr(info, "vmem_capacity_bytes", default))
    except Exception:
        return default


# ----------------------------- Stage 1: score + fold ---------------------------------------
def _fold_kernel(n_ref, w1t_ref, w2_ref, maug_ref):
    """Per source tile: Maug = [ p*N | p | 0 ] in bf16, with p = exp(fc2(tanh(fc1(N))))."""
    n = n_ref[...]                                                           # [Ts, D] f32
    h = jnp.tanh(jnp.dot(n, w1t_ref[...], preferred_element_type=jnp.float32))   # [Ts, D]
    # fc2 is a dot with a single output feature: do it as a VPU multiply + lane reduce
    # (avoids a width-1 MXU result).
    s = jnp.sum(h * w2_ref[...], axis=1, keepdims=True)                     # [Ts, 1]
    # tanh bounds |s| <= sum|w2|: exp(s) cannot over/underflow in f32, and any shared shift
    # would cancel in the per-dst softmax, so none is applied.
    p = jnp.exp(s)                                                           # [Ts, 1]
    d = n.shape[1]
    maug_ref[:, :d] = (p * n).astype(jnp.bfloat16)
    lane = jax.lax.broadcasted_iota(jnp.int32, (n.shape[0], _AUG), 1)
    maug_ref[:, d:] = jnp.where(lane == 0, p, 0.0).astype(jnp.bfloat16)


# ----------------------- Stage 2: masked softmax-aggregate ---------------------------------
def _aggregate_kernel(adj_ref, maug_ref, out_ref, acc_ref):
    """For one dst tile: out[dst] = sum_src softmax_src(e)[dst,src] * N[src]."""
    k = pl.program_id(1)

    @pl.when(k == 0)
    def _():
        acc_ref[...] = jnp.zeros_like(acc_ref)

    # bf16 x bf16 -> f32 accumulate on the MXU.  The augmented column simultaneously gives
    # denom[dst] = sum_src adj[dst, src] * p[src] in the same pass.
    acc_ref[...] += jnp.dot(adj_ref[...], maug_ref[...],
                            preferred_element_type=jnp.float32)              # [T, D+_AUG]

    @pl.when(k == pl.num_programs(1) - 1)
    def _():
        d = out_ref.shape[1]
        denom = acc_ref[:, d:d + 1]                                          # [T, 1]
        safe = jnp.where(denom > 0.0, denom, 1.0)      # isolated dst -> zeros, not NaN
        out_ref[...] = (acc_ref[:, :d] * pl.reciprocal(safe, approx=False)
                        ).astype(out_ref.dtype)


# ----------------------------------- tiling ------------------------------------------------
def _pick_tiles(V, D, vmem_limit_bytes):
    daug = D + _AUG
    # src tile: lane axis of the adj blocks -> multiple of 128 (or the full V for odd V).
    if V % 128 == 0:
        src_tile = 128
        while src_tile * 2 <= min(V, 2048) and V % (src_tile * 2) == 0:
            src_tile *= 2
    else:
        src_tile = V
    # dst tile: biggest multiple of 8 whose double-buffered pipeline (adj/out tiles), the
    # double-buffered Maug tile and the f32 accumulator fit the scoped-VMEM budget, while
    # still leaving >= ~8 grid steps so pipelining / megacore sharding has work to overlap.
    budget = int(vmem_limit_bytes * 0.75)                  # headroom for compiler temps
    resident = 2 * src_tile * daug * 2                     # Maug tile, bf16, double-buffered
    per_dst_row = (2 * src_tile * 2                        # adj tile, bf16, double-buffered
                   + 2 * D * 4                             # out tile,  f32, double-buffered
                   + daug * 4)                             # f32 accumulator scratch
    cap = max(8, (budget - resident) // per_dst_row)
    cap = min(cap, max(8, V // 8))
    dst_tile = None
    for t in (1024, 512, 256, 128, 64, 32, 16, 8):
        if t <= cap and V % t == 0:
            dst_tile = t
            break
    if dst_tile is None:                                   # small / irregular V
        dst_tile = V
    return dst_tile, src_tile


# ----------------------------------- wrapper -----------------------------------------------
def local_node_gat(N, adj, W1, w2, *, dst_tile=None, src_tile=None, vmem_limit_bytes=None):
    """Forward pass of LocalNodeGATLayer on a dense adjacency mask.

    N: [V, D] node features, adj: [V, V] with adj[dst, src] = 1 iff edge src->dst,
    W1: [D, D] fc1.weight, w2: [1, D] fc2.weight.
    """
    V, D = N.shape
    assert adj.shape == (V, V) and W1.shape == (D, D) and w2.shape == (1, D)
    # TODO(synk): pad the feature axis when D is not a multiple of 128 (lane-aligned aug slice).
    assert D % 128 == 0, "node_embed_size must be a multiple of 128 for this kernel"

    N = N.astype(jnp.float32)
    adj_bf16 = adj.astype(jnp.bfloat16)       # 0/1 exact in bf16 -> halves the dominant DMA
    W1t = W1.astype(jnp.float32).T            # wrapper-side transpose: layout plumbing only
    w2 = w2.astype(jnp.float32)

    if vmem_limit_bytes is None:
        vmem_limit_bytes = (_vmem_capacity_bytes() * 3) // 4     # below physical / scoped max
    auto_dst, auto_src = _pick_tiles(V, D, vmem_limit_bytes)
    dst_tile = auto_dst if dst_tile is None else dst_tile
    src_tile = auto_src if src_tile is None else src_tile
    assert V % dst_tile == 0 and V % src_tile == 0
    daug = D + _AUG

    # ---- Stage 1: per-source scores folded into bf16 Maug = [p*N | p | 0] ---------------
    fold_tile = src_tile
    maug = pl.pallas_call(
        _fold_kernel,
        out_shape=jax.ShapeDtypeStruct((V, daug), jnp.bfloat16),
        grid=(V // fold_tile,),
        in_specs=[pl.BlockSpec((fold_tile, D), lambda i: (i, 0)),
                  pl.BlockSpec((D, D), lambda i: (0, 0)),
                  pl.BlockSpec((1, D), lambda i: (0, 0))],
        out_specs=pl.BlockSpec((fold_tile, daug), lambda i: (i, 0)),
        compiler_params=pltpu.CompilerParams(
            dimension_semantics=("parallel",),
            vmem_limit_bytes=int(vmem_limit_bytes)),
        cost_estimate=pl.CostEstimate(
            flops=2 * V * D * D + 3 * V * D,
            transcendentals=V * D + V,                       # tanh + exp
            bytes_accessed=4 * (V * D + D * D + D) + 2 * V * daug),
    )(N, W1t, w2)

    # ---- Stage 2: dst x src tiled  out = (adj @ Maug)[:, :D] / (adj @ Maug)[:, D] -------
    grid = (V // dst_tile, V // src_tile)
    out = pl.pallas_call(
        _aggregate_kernel,
        out_shape=jax.ShapeDtypeStruct((V, D), jnp.float32),
        grid=grid,
        in_specs=[pl.BlockSpec((dst_tile, src_tile), lambda i, k: (i, k)),   # adj (bf16)
                  pl.BlockSpec((src_tile, daug), lambda i, k: (k, 0))],      # Maug (bf16)
        out_specs=pl.BlockSpec((dst_tile, D), lambda i, k: (i, 0)),
        scratch_shapes=[pltpu.VMEM((dst_tile, daug), jnp.float32)],
        compiler_params=pltpu.CompilerParams(
            dimension_semantics=("parallel", "arbitrary"),
            vmem_limit_bytes=int(vmem_limit_bytes)),
        cost_estimate=pl.CostEstimate(
            flops=2 * V * V * daug,
            transcendentals=0,
            bytes_accessed=2 * V * V + 2 * V * daug * (V // dst_tile) + 4 * V * D),
    )(adj_bf16, maug)
    return out


# ---------------------------------- reference -----------------------------------------------
def reference_jax(N, adj, W1, w2):
    """Direct transcription of the PyTorch module's message/reduce semantics (f32)."""
    hp = jax.lax.Precision.HIGHEST
    h = jnp.tanh(jnp.dot(N, W1.T, precision=hp))
    s = jnp.dot(h, w2.T, precision=hp)[:, 0]               # [V] per-source score
    logits = jnp.broadcast_to(s[None, :], adj.shape)
    masked = jnp.where(adj > 0, logits, -1e30)
    m = jnp.max(masked, axis=1, keepdims=True)
    e = jnp.exp(masked - m) * adj
    denom = jnp.sum(e, axis=1, keepdims=True)
    attn = e / jnp.where(denom > 0, denom, 1.0)
    return jnp.dot(attn, N, precision=hp)


if __name__ == "__main__":
    V = 256          # number of nodes    (multiple of 128 -> lane-dense adj / Maug)
    D = 128          # node_embed_size    (multiple of 128 -> lane-dense output stores)

    key = jax.random.PRNGKey(0)
    k_n, k_w1, k_w2 = jax.random.split(key, 3)

    N = jax.random.normal(k_n, (V, D), dtype=jnp.float32)

    # torch Linear default init: U(-1/sqrt(fan_in), 1/sqrt(fan_in)), bias=False
    bound = 1.0 / math.sqrt(D)
    W1 = jax.random.uniform(k_w1, (D, D), jnp.float32, -bound, bound)   # fc1.weight
    w2 = jax.random.uniform(k_w2, (1, D), jnp.float32, -bound, bound)   # fc2.weight

    # Synthetic graph: self-loop + ring edge (i-1) -> i; every node has in-degree 2.
    # adj[dst, src] = 1.0 iff edge src -> dst.
    eye = jnp.eye(V, dtype=jnp.float32)
    ring = jnp.roll(eye, shift=1, axis=1)
    adj = jnp.clip(eye + ring, 0.0, 1.0)

    out = local_node_gat(N, adj, W1, w2)     # auto tiles: dst_tile=32 (8 dst steps), src_tile=256
    out = jax.block_until_ready(out)

    ref = reference_jax(N, adj, W1, w2)
    assert out.shape == (V, D)
    err = float(jnp.max(jnp.abs(out - ref)))
    # bf16 MXU operands (f32 accumulation): expect ~1e-3-level relative drift vs f32 reference.
    assert jnp.allclose(out, ref, atol=3e-2, rtol=3e-2), f"mismatch vs reference (max abs err {err})"

    print("KERNEL_OK")
</pallas_src>

<mosaic_0001>
module attributes {stable_mosaic.version = 11 : i64} {
  func.func @_fold_kernel(%arg0: i32, %arg1: memref<256x128xf32, #tpu.memory_space<vmem>>, %arg2: memref<128x128xf32, #tpu.memory_space<vmem>>, %arg3: memref<1x128xf32, #tpu.memory_space<vmem>>, %arg4: memref<256x256xbf16, #tpu.memory_space<vmem>>) attributes {dimension_semantics = [#tpu.dimension_semantics<parallel>], iteration_bounds = array<i64: 1>, scalar_prefetch = 0 : i64, scratch_operands = 0 : i64, tpu.core_type = #tpu.core_type<tc>, window_params = [{transform_indices = @transform_0, window_bounds = array<i64: 256, 128>}, {pipeline_mode = #tpu.pipeline_mode<synchronous>, transform_indices = @transform_1, window_bounds = array<i64: 128, 128>}, {pipeline_mode = #tpu.pipeline_mode<synchronous>, transform_indices = @transform_2, window_bounds = array<i64: 1, 128>}, {transform_indices = @transform_3, window_bounds = array<i64: 256, 256>}]} {
    %c0 = arith.constant 0 : index
    %c0_0 = arith.constant 0 : index
    %0 = vector.load %arg1[%c0, %c0_0] : memref<256x128xf32, #tpu.memory_space<vmem>>, vector<256x128xf32>
    %c0_1 = arith.constant 0 : index
    %c0_2 = arith.constant 0 : index
    %1 = vector.load %arg2[%c0_1, %c0_2] : memref<128x128xf32, #tpu.memory_space<vmem>>, vector<128x128xf32>
    %cst = arith.constant dense<0.000000e+00> : vector<256x128xf32>
    %2 = tpu.matmul %0, %1, %cst {dimension_numbers = #tpu.dot_dimension_numbers<[1], [0], [0], [1], [0, 0, 1, 1], [], []>} : vector<256x128xf32>, vector<128x128xf32>, vector<256x128xf32> -> vector<256x128xf32>
    %3 = math.tanh %2 : vector<256x128xf32>
    %c0_3 = arith.constant 0 : index
    %c0_4 = arith.constant 0 : index
    %4 = vector.load %arg3[%c0_3, %c0_4] : memref<1x128xf32, #tpu.memory_space<vmem>>, vector<1x128xf32>
    %5 = vector.broadcast %4 : vector<1x128xf32> to vector<256x128xf32>
    %6 = arith.mulf %3, %5 : vector<256x128xf32>
    %cst_5 = arith.constant dense<0.000000e+00> : vector<256xf32>
    %7 = vector.multi_reduction <add>, %6, %cst_5 [1] : vector<256x128xf32> to vector<256xf32>
    %8 = vector.shape_cast %7 : vector<256xf32> to vector<256x1xf32>
    %9 = math.exp %8 : vector<256x1xf32>
    %10 = vector.broadcast %9 : vector<256x1xf32> to vector<256x128xf32>
    %11 = arith.mulf %10, %0 : vector<256x128xf32>
    %12 = arith.truncf %11 : vector<256x128xf32> to vector<256x128xbf16>
    %c0_6 = arith.constant 0 : index
    %c0_7 = arith.constant 0 : index
    %13 = vector.load %arg4[%c0_6, %c0_7] : memref<256x256xbf16, #tpu.memory_space<vmem>>, vector<256x128xbf16>
    tpu.vector_store %arg4[%c0_6, %c0_7], %12 {strides = array<i32>} : memref<256x256xbf16, #tpu.memory_space<vmem>>, vector<256x128xbf16>,
    %14 = tpu.iota {dimensions = array<i32: 1>} : vector<256x128xi32>
    %c0_i32 = arith.constant 0 : i32
    %15 = vector.broadcast %c0_i32 : i32 to vector<256x128xi32>
    %16 = arith.cmpi eq, %14, %15 : vector<256x128xi32>
    %cst_8 = arith.constant 0.000000e+00 : f32
    %17 = vector.shape_cast %9 : vector<256x1xf32> to vector<256x1xf32>
    %18 = vector.broadcast %17 : vector<256x1xf32> to vector<256x128xf32>
    %19 = vector.broadcast %cst_8 : f32 to vector<256x128xf32>
    %20 = arith.select %16, %18, %19 : vector<256x128xi1>, vector<256x128xf32>
    %21 = arith.truncf %20 : vector<256x128xf32> to vector<256x128xbf16>
    %c0_9 = arith.constant 0 : index
    %c128 = arith.constant 128 : index
    %22 = vector.load %arg4[%c0_9, %c128] : memref<256x256xbf16, #tpu.memory_space<vmem>>, vector<256x128xbf16>
    tpu.vector_store %arg4[%c0_9, %c128], %21 {strides = array<i32>} : memref<256x256xbf16, #tpu.memory_space<vmem>>, vector<256x128xbf16>,
    return
  }
  func.func @transform_0(%arg0: i32) -> (i32, i32) {
    %c0_i32 = arith.constant 0 : i32
    %c0_i32_0 = arith.constant 0 : i32
    return %arg0, %c0_i32 : i32, i32
  }
  func.func @transform_1(%arg0: i32) -> (i32, i32) {
    %c0_i32 = arith.constant 0 : i32
    %c0_i32_0 = arith.constant 0 : i32
    %c0_i32_1 = arith.constant 0 : i32
    return %c0_i32, %c0_i32_0 : i32, i32
  }
  func.func @transform_2(%arg0: i32) -> (i32, i32) {
    %c0_i32 = arith.constant 0 : i32
    %c0_i32_0 = arith.constant 0 : i32
    %c0_i32_1 = arith.constant 0 : i32
    return %c0_i32, %c0_i32_0 : i32, i32
  }
  func.func @transform_3(%arg0: i32) -> (i32, i32) {
    %c0_i32 = arith.constant 0 : i32
    %c0_i32_0 = arith.constant 0 : i32
    return %arg0, %c0_i32 : i32, i32
  }
}

</mosaic_0001>

<bundles_post_ra>
// kernel: tpu_custom_call.1
= control target key start
LH: loop header
LB: loop body
LE: loop exit
PB: predicated region body
PF: predicated region fallthrough
CT: control target
= control target key end

     0   :  { %8 = vsyncpa [#allocation3], 0  ;;  %s1732_s0 = inlined_call_operand.hbm [shape: f32[256,128], index: 0, kind: input, shape index: {}]   ;;  %s1733_s1 = inlined_call_operand.hbm [shape: f32[128,128], index: 1, kind: input, shape index: {}]   ;;  %s1734_s2 = inlined_call_operand.vmem [shape: f32[1,128], index: 2, kind: input, shape index: {}]   ;;  %s1735_s3 = inlined_call_operand.hbm [shape: bf16[256,256], index: 3, kind: output, shape index: {}]  }
   0x1   :  { %9 = vsyncpa [#allocation6], 0 }
   0x2   :  { %10 = vsyncpa [#allocation4], 0  ;;  %s1430_s12 = smov [#allocation2]   ;;  %s1358_s16 = scalar_lea.hbm %s1732_s0, 4096 }
   0x3   :  { %s16_s13 = sshll.u32 %s1430_s12, 4  ;;  %p1359_p0 = scmp.ne.s32.totalorder %s1732_s0, %s1358_s16  ;;  %s17_s13 = int_to_ptr.vmem [resolvable:$true] %s16_s13 }
   0x4   :  { %p1362_p1 = scmp.lt.u32.totalorder %s1358_s16, %s1732_s0 }
   0x6   :  { %p1364_p2 = pnand %p1362_p1, %p1359_p0 }
   0x8   :  { %1367 = shalt.err (!%p1364_p2)
}
   0x9   :  { %s1368_s21 = scalar_lea.vmem %s17_s13, 4096  ;;  %p1373_p4 = scmp.lt.s32.totalorder %s17_s13, %s17_s13 }
   0xa   :  { %p1369_p3 = scmp.ne.s32.totalorder %s17_s13, %s1368_s21  ;;  %p1374_p5 = scmp.lt.s32.totalorder %s1368_s21, %s1368_s21 }
   0xc   :  { %p1375_p6 = por %p1374_p5, %p1373_p4 }
   0xe   :  { %p1376_p7 = pnand %p1375_p6, %p1369_p3 }
  0x10   :  { %1379 = shalt.err (!%p1376_p7)
}
  0x11   :  { %s1431_s22 = smov 128   ;;  %s1432_s23 = smov 8  }
  0x12   :  { %22 = dma.hbm_to_vmem [thread:$0]  %s1732_s0, 4096, %s17_s13, [#allocation3], %s1431_s22, %s1431_s22, %s1432_s23  }
  0x13   :  { %s1433_s26 = smov [#allocation5]   ;;  %s1380_s30 = scalar_lea.hbm %s1733_s1, 2048 }
  0x14   :  { %s28_s27 = sshll.u32 %s1433_s26, 4  ;;  %p1381_p8 = scmp.ne.s32.totalorder %s1733_s1, %s1380_s30  ;;  %s29_s27 = int_to_ptr.vmem [resolvable:$true] %s28_s27 }
  0x15   :  { %p1384_p9 = scmp.lt.u32.totalorder %s1380_s30, %s1733_s1 }
  0x17   :  { %p1386_p10 = pnand %p1384_p9, %p1381_p8 }
  0x19   :  { %1389 = shalt.err (!%p1386_p10)
}
  0x1a   :  { %s1390_s8 = scalar_lea.vmem %s29_s27, 2048  ;;  %p1395_p12 = scmp.lt.s32.totalorder %s29_s27, %s29_s27 }
  0x1b   :  { %p1391_p11 = scmp.ne.s32.totalorder %s29_s27, %s1390_s8  ;;  %p1396_p13 = scmp.lt.s32.totalorder %s1390_s8, %s1390_s8 }
  0x1d   :  { %p1397_p0 = por %p1396_p13, %p1395_p12 }
  0x1f   :  { %p1398_p1 = pnand %p1397_p0, %p1391_p11 }
  0x21   :  { %1401 = shalt.err (!%p1398_p1)
}
  0x22   :  { %34 = dma.hbm_to_vmem [thread:$0]  %s1733_s1, 2048, %s29_s27, [#allocation6], %s1431_s22, %s1431_s22, %s1432_s23  }
  0x23   :  { %1424 = dma.done.wait [#allocation3], 4096  }
  0x24   :  { %1425 = vsyncadd [#allocation3], 4294963200 }
  0x25   :  { %1426 = dma.done.wait [#allocation6], 2048  }
  0x26   :  { %1427 = vsyncadd [#allocation6], 4294965248  ;;  %v75_v0 = vld [vmem:[#allocation5] sm:$0xff]  ;;  %v76_v1 = vld [vmem:[#allocation5 + $0x8] sm:$0xff] }
  0x27   :  { %v77_v2 = vld [vmem:[#allocation5 + $0x10] sm:$0xff]  ;;  %v1177_v3 = vpack.c.bf16 %v76_v1, %v75_v0  ;;  %v78_v4 = vld [vmem:[#allocation5 + $0x18] sm:$0xff]  ;;  %v79_v6 = vld [vmem:[#allocation5 + $0x20] sm:$0xff] }
  0x28   :  { %v1181_v5 = vpack.c.bf16 %v78_v4, %v77_v2  ;;  %v80_v7 = vld [vmem:[#allocation5 + $0x28] sm:$0xff]  ;;  %v1485_v9 = vld [vmem:[#allocation2] sm:$0xff]  ;;  %v81_v11 = vld [vmem:[#allocation5 + $0x30] sm:$0xff] }
  0x29   :  { %1178 = vmatprep.subr.bf16.mxu0 %v1177_v3  ;;  %1209 = vmatprep.subr.bf16.mxu1 %v1177_v3  ;;  %v1185_v8 = vpack.c.bf16 %v80_v7, %v79_v6  ;;  %v1487_v10 = vld [vmem:[#allocation2 + $0x80] sm:$0xff]  ;;  %v82_v12 = vld [vmem:[#allocation5 + $0x38] sm:$0xff]  ;;  %v84_v15 = vld [vmem:[#allocation5 + $0x48] sm:$0xff] }
  0x2a   :  { %1180 = vmatpush3.bf16.msra.mxu0 %v1177_v3  ;;  %1217 = vmatpush3.bf16.msra.mxu1 %v1177_v3  ;;  %v1189_v13 = vpack.c.bf16 %v82_v12, %v81_v11  ;;  %v83_v14 = vld [vmem:[#allocation5 + $0x40] sm:$0xff]  ;;  %v85_v17 = vld [vmem:[#allocation5 + $0x50] sm:$0xff]  ;;  %v86_v18 = vld [vmem:[#allocation5 + $0x58] sm:$0xff] }
  0x2b   :  { %1182 = vmatprep.subr.bf16.mxu0 %v1181_v5  ;;  %1210 = vmatprep.subr.bf16.mxu1 %v1181_v5  ;;  %v1193_v16 = vpack.c.bf16 %v84_v15, %v83_v14  ;;  %v1197_v19 = vpack.c.bf16 %v86_v18, %v85_v17  ;;  %v87_v20 = vld [vmem:[#allocation5 + $0x60] sm:$0xff]  ;;  %v88_v21 = vld [vmem:[#allocation5 + $0x68] sm:$0xff]  ;;  %v89_v23 = vld [vmem:[#allocation5 + $0x70] sm:$0xff] }
  0x2c   :  { %1129 = vmatprep.mubr.f32.mxu0 %v1485_v9  ;;  %1153 = vmatprep.mubr.f32.mxu1 %v1487_v10  ;;  %v1201_v22 = vpack.c.bf16 %v88_v21, %v87_v20  ;;  %v90_v24 = vld [vmem:[#allocation5 + $0x78] sm:$0xff]  ;;  %v1491_v26 = vld [vmem:[#allocation2 + $0x8] sm:$0xff]  ;;  %v1495_v28 = vld [vmem:[#allocation2 + $0x10] sm:$0xff] }
  0x2d   :  { %v1205_v25 = vpack.c.bf16 %v90_v24, %v89_v23  ;;  %v1493_v27 = vld [vmem:[#allocation2 + $0x88] sm:$0xff]  ;;  %v1497_v29 = vld [vmem:[#allocation2 + $0x90] sm:$0xff]  ;;  %v1502_v30 = vld [vmem:[#allocation2 + $0x18] sm:$0xff] }
  0x2e   :  { %1184 = vmatpush3.bf16.msra.mxu0 %v1181_v5  ;;  %1218 = vmatpush3.bf16.msra.mxu1 %v1181_v5  ;;  %v1505_v31 = vld [vmem:[#allocation2 + $0x98] sm:$0xff]  ;;  %v1507_v32 = vld [vmem:[#allocation2 + $0x20] sm:$0xff]  ;;  %v1514_v34 = vld [vmem:[#allocation2 + $0x28] sm:$0xff] }
  0x2f   :  { %1186 = vmatprep.subr.bf16.mxu0 %v1185_v8  ;;  %1211 = vmatprep.subr.bf16.mxu1 %v1185_v8  ;;  %v1509_v33 = vld [vmem:[#allocation2 + $0xa0] sm:$0xff]  ;;  %v1517_v35 = vld [vmem:[#allocation2 + $0xa8] sm:$0xff]  ;;  %v1519_v36 = vld [vmem:[#allocation2 + $0x30] sm:$0xff] }
  0x30   :  { %v1521_v37 = vld [vmem:[#allocation2 + $0xb0] sm:$0xff]  ;;  %v1526_v38 = vld [vmem:[#allocation2 + $0x38] sm:$0xff]  ;;  %v1531_v40 = vld [vmem:[#allocation2 + $0x40] sm:$0xff] }
  0x31   :  { %v1529_v39 = vld [vmem:[#allocation2 + $0xb8] sm:$0xff]  ;;  %v1533_v41 = vld [vmem:[#allocation2 + $0xc0] sm:$0xff]  ;;  %v1538_v42 = vld [vmem:[#allocation2 + $0x48] sm:$0xff] }
  0x32   :  { %1188 = vmatpush3.bf16.msra.mxu0 %v1185_v8  ;;  %1219 = vmatpush3.bf16.msra.mxu1 %v1185_v8  ;;  %v1541_v43 = vld [vmem:[#allocation2 + $0xc8] sm:$0xff]  ;;  %v1543_v44 = vld [vmem:[#allocation2 + $0x50] sm:$0xff]  ;;  %v1550_v46 = vld [vmem:[#allocation2 + $0x58] sm:$0xff] }
  0x33   :  { %1190 = vmatprep.subr.bf16.mxu0 %v1189_v13  ;;  %1212 = vmatprep.subr.bf16.mxu1 %v1189_v13  ;;  %v1545_v45 = vld [vmem:[#allocation2 + $0xd0] sm:$0xff]  ;;  %v1553_v47 = vld [vmem:[#allocation2 + $0xd8] sm:$0xff]  ;;  %v1555_v48 = vld [vmem:[#allocation2 + $0x60] sm:$0xff] }
  0x34   :  { %v1557_v49 = vld [vmem:[#allocation2 + $0xe0] sm:$0xff]  ;;  %v1562_v50 = vld [vmem:[#allocation2 + $0x68] sm:$0xff]  ;;  %v1567_v52 = vld [vmem:[#allocation2 + $0x70] sm:$0xff] }
  0x35   :  { %v1565_v51 = vld [vmem:[#allocation2 + $0xe8] sm:$0xff]  ;;  %v1569_v53 = vld [vmem:[#allocation2 + $0xf0] sm:$0xff]  ;;  %v1574_v54 = vld [vmem:[#allocation2 + $0x78] sm:$0xff] }
  0x36   :  { %1192 = vmatpush3.bf16.msra.mxu0 %v1189_v13  ;;  %1220 = vmatpush3.bf16.msra.mxu1 %v1189_v13  ;;  %v1577_v55 = vld [vmem:[#allocation2 + $0xf8] sm:$0xff]  ;;  %v1584_v2 = vld [vmem:[%s1734_s2] ss:$0 sm:$0xff]  ;;  %s1434_s2 = smov [#allocation7]  }
  0x37   :  { %1194 = vmatprep.subr.bf16.mxu0 %v1193_v16  ;;  %1213 = vmatprep.subr.bf16.mxu1 %v1193_v16  ;;  %s907_s11 = sshll.u32 %s1434_s2, 4  ;;  %s908_s11 = int_to_ptr.vmem [resolvable:$true] %s907_s11 }
  0x38   :  { %s1402_s12 = scalar_lea.vmem %s908_s11, 4096  ;;  %p1407_p3 = scmp.lt.s32.totalorder %s908_s11, %s908_s11 }
  0x39   :  { %p1403_p2 = scmp.ne.s32.totalorder %s908_s11, %s1402_s12  ;;  %p1408_p4 = scmp.lt.s32.totalorder %s1402_s12, %s1402_s12 }
  0x3a   :  { %1196 = vmatpush3.bf16.msra.mxu0 %v1193_v16  ;;  %1221 = vmatpush3.bf16.msra.mxu1 %v1193_v16 }
  0x3b   :  { %1198 = vmatprep.subr.bf16.mxu0 %v1197_v19  ;;  %1214 = vmatprep.subr.bf16.mxu1 %v1197_v19  ;;  %p1409_p5 = por %p1408_p4, %p1407_p3 }
  0x3d   :  { %p1410_p6 = pnand %p1409_p5, %p1403_p2 }
  0x3e   :  { %1200 = vmatpush3.bf16.msra.mxu0 %v1197_v19  ;;  %1222 = vmatpush3.bf16.msra.mxu1 %v1197_v19 }
  0x3f   :  { %1202 = vmatprep.subr.bf16.mxu0 %v1201_v22  ;;  %1215 = vmatprep.subr.bf16.mxu1 %v1201_v22 }
  0x42   :  { %1204 = vmatpush3.bf16.msra.mxu0 %v1201_v22  ;;  %1223 = vmatpush3.bf16.msra.mxu1 %v1201_v22 }
  0x43   :  { %1206 = vmatprep.subr.bf16.mxu0 %v1205_v25  ;;  %1216 = vmatprep.subr.bf16.mxu1 %v1205_v25 }
  0x46   :  { %1208 = vmatpush3.bf16.msra.mxu0 %v1205_v25  ;;  %1224 = vmatpush3.bf16.msra.mxu1 %v1205_v25 }
  0x49   :  { %1130 = vmatmul.mubr.f32.vlgmr.msra.gmra.mrb[0].mxu0 %v1491_v26  ;;  %1154 = vmatmul.mubr.f32.vlgmr.msra.gmra.mrb[0].mxu1 %v1493_v27 }
  0x4a   :  { %1132 = vmatprep.mubr.f32.mxu0 %v1495_v28  ;;  %1156 = vmatprep.mubr.f32.mxu1 %v1497_v29 }
  0x4d   :  { %1133 = vmatmul.mubr.f32.gmra.mrb[2].mxu0 %v1502_v30  ;;  %1157 = vmatmul.mubr.f32.gmra.mrb[2].mxu1 %v1505_v31 }
  0x4e   :  { %1135 = vmatprep.mubr.f32.mxu0 %v1507_v32  ;;  %1159 = vmatprep.mubr.f32.mxu1 %v1509_v33 }
  0x51   :  { %1136 = vmatmul.mubr.f32.gmra.mrb[4].mxu0 %v1514_v34  ;;  %1160 = vmatmul.mubr.f32.gmra.mrb[4].mxu1 %v1517_v35 }
  0x52   :  { %1138 = vmatprep.mubr.f32.mxu0 %v1519_v36  ;;  %1162 = vmatprep.mubr.f32.mxu1 %v1521_v37 }
  0x55   :  { %1139 = vmatmul.mubr.f32.gmra.mrb[6].mxu0 %v1526_v38  ;;  %1163 = vmatmul.mubr.f32.gmra.mrb[6].mxu1 %v1529_v39 }
  0x56   :  { %1141 = vmatprep.mubr.f32.mxu0 %v1531_v40  ;;  %1165 = vmatprep.mubr.f32.mxu1 %v1533_v41 }
  0x59   :  { %1142 = vmatmul.mubr.f32.gmra.mrb[8].mxu0 %v1538_v42  ;;  %1166 = vmatmul.mubr.f32.gmra.mrb[8].mxu1 %v1541_v43 }
  0x5a   :  { %1144 = vmatprep.mubr.f32.mxu0 %v1543_v44  ;;  %1168 = vmatprep.mubr.f32.mxu1 %v1545_v45 }
  0x5d   :  { %1145 = vmatmul.mubr.f32.gmra.mrb[10].mxu0 %v1550_v46  ;;  %1169 = vmatmul.mubr.f32.gmra.mrb[10].mxu1 %v1553_v47 }
  0x5e   :  { %1147 = vmatprep.mubr.f32.mxu0 %v1555_v48  ;;  %1171 = vmatprep.mubr.f32.mxu1 %v1557_v49 }
  0x61   :  { %1148 = vmatmul.mubr.f32.gmra.mrb[12].mxu0 %v1562_v50  ;;  %1172 = vmatmul.mubr.f32.gmra.mrb[12].mxu1 %v1565_v51 }
  0x62   :  { %1150 = vmatprep.mubr.f32.mxu0 %v1567_v52  ;;  %1174 = vmatprep.mubr.f32.mxu1 %v1569_v53 }
  0x65   :  { %1151 = vmatmul.mubr.f32.gmra.mrb[14].mxu0 %v1574_v54  ;;  %1175 = vmatmul.mubr.f32.gmra.mrb[14].mxu1 %v1577_v55 }
 0x11c   :  { %v1131_v56 = vpop.f32.mrb[0].mxu0  ;;  %v1155_v57 = vpop.f32.mrb[0].mxu1 }
 0x11d   :  { %1230 = vtanh.f32 %v1131_v56  ;;  %v157_v58 = vpop.f32.mrb[1].mxu0  ;;  %v237_v59 = vpop.f32.mrb[1].mxu1 }
 0x11e   :  { %1232 = vtanh.f32 %v1155_v57 }
 0x11f   :  { %1234 = vtanh.f32 %v157_v58 }
 0x120   :  { %v1134_v60 = vpop.f32.mrb[2].mxu0  ;;  %v1158_v61 = vpop.f32.mrb[2].mxu1 }
 0x121   :  { %1236 = vtanh.f32 %v1134_v60  ;;  %v167_v62 = vpop.f32.mrb[3].mxu0  ;;  %v247_v63 = vpop.f32.mrb[3].mxu1 }
 0x122   :  { %1238 = vtanh.f32 %v237_v59 }
 0x123   :  { %1240 = vtanh.f32 %v1158_v61 }
 0x124   :  { %v1137_v0 = vpop.f32.mrb[4].mxu0  ;;  %v1161_v1 = vpop.f32.mrb[4].mxu1  ;;  %1242 = vtanh.f32 %v247_v63 }
 0x125   :  { %v177_v3 = vpop.f32.mrb[5].mxu0  ;;  %v257_v4 = vpop.f32.mrb[5].mxu1  ;;  %1244 = vtanh.f32 %v167_v62 }
 0x126   :  { %1246 = vtanh.f32 %v177_v3 }
 0x127   :  { %v1231_v5 = vpop.eup %1230  ;;  %1248 = vtanh.f32 %v1137_v0 }
 0x128   :  { %v1233_v6 = vpop.eup %1232  ;;  %v356_v7 = vmul.f32 %v1231_v5, %v1584_v2  ;;  %v1140_v8 = vpop.f32.mrb[6].mxu0  ;;  %1250 = vtanh.f32 %v257_v4 }
 0x129   :  { %v1164_v11 = vpop.f32.mrb[6].mxu1  ;;  %v1235_v12 = vpop.eup %1234  ;;  %v372_v13 = vmul.f32 %v1233_v6, %v1584_v2  ;;  %1252 = vtanh.f32 %v1161_v1 }
 0x12a   :  { %v187_v14 = vpop.f32.mrb[7].mxu0  ;;  %v267_v15 = vpop.f32.mrb[7].mxu1  ;;  %389 = vadd.xlane.f32.xlu0 %v356_v7  ;;  %v355_v18 = vmul.f32 %v1235_v12, %v1584_v2 }
 0x12b   :  { %v1237_v16 = vpop.eup %1236  ;;  %421 = vadd.xlane.f32.xlu1 %v372_v13  ;;  %1254 = vtanh.f32 %v187_v14 }
 0x12c   :  { %v1239_v17 = vpop.eup %1238  ;;  %v358_v19 = vmul.f32 %v1237_v16, %v1584_v2  ;;  %v1143_v20 = vpop.f32.mrb[8].mxu0  ;;  %1256 = vtanh.f32 %v1140_v8 }
 0x12d   :  { %v1167_v21 = vpop.f32.mrb[8].mxu1  ;;  %v1241_v22 = vpop.eup %1240  ;;  %v371_v56 = vmul.f32 %v1239_v17, %v1584_v2  ;;  %1258 = vtanh.f32 %v267_v15 }
 0x12e   :  { %v197_v23 = vpop.f32.mrb[9].mxu0  ;;  %v277_v24 = vpop.f32.mrb[9].mxu1  ;;  %387 = vadd.xlane.f32.xlu0 %v355_v18  ;;  %v374_v25 = vmul.f32 %v1241_v22, %v1584_v2  ;;  %1260 = vtanh.f32 %v1164_v11 }
 0x12f   :  { %393 = vadd.xlane.f32.xlu1 %v358_v19  ;;  %v1243_v59 = vpop.eup %1242  ;;  %1262 = vtanh.f32 %v197_v23 }
 0x130   :  { %v1146_v57 = vpop.f32.mrb[10].mxu0  ;;  %v1170_v58 = vpop.f32.mrb[10].mxu1  ;;  %v373_v1 = vmul.f32 %v1243_v59, %v1584_v2  ;;  %1264 = vtanh.f32 %v1143_v20 }
 0x131   :  { %v207_v60 = vpop.f32.mrb[11].mxu0  ;;  %v287_v61 = vpop.f32.mrb[11].mxu1  ;;  %1266 = vtanh.f32 %v277_v24 }
 0x132   :  { %v1245_v62 = vpop.eup %1244  ;;  %419 = vadd.xlane.f32.xlu0 %v371_v56  ;;  %1268 = vtanh.f32 %v1167_v21 }
 0x133   :  { %v1247_v63 = vpop.eup %1246  ;;  %425 = vadd.xlane.f32.xlu1 %v374_v25  ;;  %v357_v5 = vmul.f32 %v1245_v62, %v1584_v2  ;;  %1270 = vtanh.f32 %v207_v60 }
 0x134   :  { %v1249_v0 = vpop.eup %1248  ;;  %v1149_v3 = vpop.f32.mrb[12].mxu0  ;;  %v359_v12 = vmul.f32 %v1247_v63, %v1584_v2  ;;  %1272 = vtanh.f32 %v1146_v57 }
 0x135   :  { %v1173_v4 = vpop.f32.mrb[12].mxu1  ;;  %v217_v6 = vpop.f32.mrb[13].mxu0  ;;  %v360_v8 = vmul.f32 %v1249_v0, %v1584_v2  ;;  %1274 = vtanh.f32 %v287_v61 }
 0x136   :  { %v297_v7 = vpop.f32.mrb[13].mxu1  ;;  %423 = vadd.xlane.f32.xlu0 %v373_v1  ;;  %v1251_v13 = vpop.eup %1250  ;;  %1276 = vtanh.f32 %v1170_v58 }
 0x137   :  { %391 = vadd.xlane.f32.xlu1 %v357_v5  ;;  %v1253_v14 = vpop.eup %1252  ;;  %v375_v15 = vmul.f32 %v1251_v13, %v1584_v2  ;;  %1278 = vtanh.f32 %v217_v6 }
 0x138   :  { %v1152_v16 = vpop.f32.mrb[14].mxu0  ;;  %v1176_v17 = vpop.f32.mrb[14].mxu1  ;;  %v376_v11 = vmul.f32 %v1253_v14, %v1584_v2  ;;  %1280 = vtanh.f32 %v1149_v3 }
 0x139   :  { %v227_v18 = vpop.f32.mrb[15].mxu0  ;;  %v307_v19 = vpop.f32.mrb[15].mxu1  ;;  %1282 = vtanh.f32 %v297_v7 }
 0x13a   :  { %395 = vadd.xlane.f32.xlu0 %v359_v12  ;;  %v1255_v22 = vpop.eup %1254  ;;  %1284 = vtanh.f32 %v1173_v4 }
 0x13b   :  { %397 = vadd.xlane.f32.xlu1 %v360_v8  ;;  %v1257_v25 = vpop.eup %1256  ;;  %v361_v56 = vmul.f32 %v1255_v22, %v1584_v2  ;;  %1286 = vtanh.f32 %v227_v18 }
 0x13c   :  { %v1259_v59 = vpop.eup %1258  ;;  %v362_v23 = vmul.f32 %v1257_v25, %v1584_v2  ;;  %1288 = vtanh.f32 %v1152_v16 }
 0x13d   :  { %v1261_v62 = vpop.eup %1260  ;;  %v377_v20 = vmul.f32 %v1259_v59, %v1584_v2  ;;  %1290 = vtanh.f32 %v307_v19 }
 0x13e   :  { %427 = vadd.xlane.f32.xlu0 %v375_v15  ;;  %v1263_v63 = vpop.eup %1262  ;;  %v378_v0 = vmul.f32 %v1261_v62, %v1584_v2  ;;  %1292 = vtanh.f32 %v1176_v17 }
 0x13f   :  { %429 = vadd.xlane.f32.xlu1 %v376_v11  ;;  %v1265_v1 = vpop.eup %1264  ;;  %v363_v21 = vmul.f32 %v1263_v63, %v1584_v2 }
 0x140   :  { %v1267_v24 = vpop.eup %1266  ;;  %v364_v5 = vmul.f32 %v1265_v1, %v1584_v2 }
 0x141   :  { %v1269_v12 = vpop.eup %1268  ;;  %v379_v57 = vmul.f32 %v1267_v24, %v1584_v2 }
 0x142   :  { %399 = vadd.xlane.f32.xlu0 %v361_v56  ;;  %v1271_v60 = vpop.eup %1270  ;;  %v380_v13 = vmul.f32 %v1269_v12, %v1584_v2  ;;  %v707_v12 = vlaneseq }
 0x143   :  { %401 = vadd.xlane.f32.xlu1 %v362_v23  ;;  %v1273_v8 = vpop.eup %1272  ;;  %v365_v58 = vmul.f32 %v1271_v60, %v1584_v2 }
 0x144   :  { %v1275_v61 = vpop.eup %1274  ;;  %v366_v14 = vmul.f32 %v1273_v8, %v1584_v2 }
 0x145   :  { %v1277_v15 = vpop.eup %1276  ;;  %v381_v3 = vmul.f32 %v1275_v61, %v1584_v2 }
 0x146   :  { %431 = vadd.xlane.f32.xlu0 %v377_v20  ;;  %v1279_v6 = vpop.eup %1278  ;;  %v382_v22 = vmul.f32 %v1277_v15, %v1584_v2 }
 0x147   :  { %433 = vadd.xlane.f32.xlu1 %v378_v0  ;;  %v1281_v11 = vpop.eup %1280  ;;  %v367_v4 = vmul.f32 %v1279_v6, %v1584_v2 }
 0x148   :  { %v1283_v7 = vpop.eup %1282  ;;  %v368_v25 = vmul.f32 %v1281_v11, %v1584_v2 }
 0x149   :  { %v1285_v56 = vpop.eup %1284  ;;  %v383_v16 = vmul.f32 %v1283_v7, %v1584_v2 }
 0x14a   :  { %403 = vadd.xlane.f32.xlu0 %v363_v21  ;;  %v1287_v18 = vpop.eup %1286  ;;  %v384_v59 = vmul.f32 %v1285_v56, %v1584_v2 }
 0x14b   :  { %405 = vadd.xlane.f32.xlu1 %v364_v5  ;;  %v1289_v23 = vpop.eup %1288  ;;  %v369_v19 = vmul.f32 %v1287_v18, %v1584_v2 }
 0x14c   :  { %v1291_v17 = vpop.eup %1290  ;;  %v370_v62 = vmul.f32 %v1289_v23, %v1584_v2 }
 0x14d   :  { %v1293_v20 = vpop.eup %1292  ;;  %v385_v63 = vmul.f32 %v1291_v17, %v1584_v2 }
 0x14e   :  { %435 = vadd.xlane.f32.xlu0 %v379_v57  ;;  %v386_v0 = vmul.f32 %v1293_v20, %v1584_v2 }
 0x14f   :  { %437 = vadd.xlane.f32.xlu1 %v380_v13 }
 0x152   :  { %407 = vadd.xlane.f32.xlu0 %v365_v58  ;;  %v1618_v58 = vand.u32 127, %v707_v12 }
 0x153   :  { %409 = vadd.xlane.f32.xlu1 %v366_v14 }
 0x154   :  { %vm709_vm0 = vcmp.eq.s32.totalorder %v1618_v58, 0 }
 0x156   :  { %439 = vadd.xlane.f32.xlu0 %v381_v3 }
 0x157   :  { %441 = vadd.xlane.f32.xlu1 %v382_v22 }
 0x15a   :  { %411 = vadd.xlane.f32.xlu0 %v367_v4 }
 0x15b   :  { %413 = vadd.xlane.f32.xlu1 %v368_v25 }
 0x15e   :  { %443 = vadd.xlane.f32.xlu0 %v383_v16 }
 0x15f   :  { %445 = vadd.xlane.f32.xlu1 %v384_v59 }
 0x162   :  { %415 = vadd.xlane.f32.xlu0 %v369_v19 }
 0x163   :  { %417 = vadd.xlane.f32.xlu1 %v370_v62 }
 0x166   :  { %447 = vadd.xlane.f32.xlu0 %v385_v63 }
 0x167   :  { %449 = vadd.xlane.f32.xlu1 %v386_v0 }
 0x1b7   :  { %v390_v1 = vpop.xlane.xlu0 %389 }
 0x1b8   :  { %v422_v21 = vpop.xlane.xlu1 %421  ;;  %v453_v24 = vmul.f32 1.442695, %v390_v1 }
 0x1b9   :  { %v485_v5 = vmul.f32 1.442695, %v422_v21 }
 0x1ba   :  { %1294 = vpow2.f32 %v453_v24 }
 0x1bb   :  { %1296 = vpow2.f32 %v485_v5  ;;  %v388_v57 = vpop.xlane.xlu0 %387 }
 0x1bc   :  { %v451_v60 = vmul.f32 1.442695, %v388_v57  ;;  %v394_v13 = vpop.xlane.xlu1 %393 }
 0x1bd   :  { %v457_v8 = vmul.f32 1.442695, %v394_v13 }
 0x1be   :  { %1298 = vpow2.f32 %v451_v60 }
 0x1bf   :  { %1300 = vpow2.f32 %v457_v8  ;;  %v420_v61 = vpop.xlane.xlu0 %419 }
 0x1c0   :  { %v483_v14 = vmul.f32 1.442695, %v420_v61  ;;  %v426_v2 = vpop.xlane.xlu1 %425 }
 0x1c1   :  { %v489_v15 = vmul.f32 1.442695, %v426_v2 }
 0x1c2   :  { %1302 = vpow2.f32 %v483_v14 }
 0x1c3   :  { %1304 = vpow2.f32 %v489_v15  ;;  %v424_v3 = vpop.xlane.xlu0 %423 }
 0x1c4   :  { %v1295_v6 = vpop.eup %1294  ;;  %v487_v22 = vmul.f32 1.442695, %v424_v3  ;;  %v392_v11 = vpop.xlane.xlu1 %391 }
 0x1c5   :  { %v1297_v4 = vpop.eup %1296  ;;  %v516_v7 = vmul.f32 %v1295_v6, %v1491_v26  ;;  %v711_v25 = vsel %vm709_vm0, %v1295_v6, 0.0  ;;  %v455_v56 = vmul.f32 1.442695, %v392_v11 }
 0x1c6   :  { %v532_v16 = vmul.f32 %v1297_v4, %v1493_v27  ;;  %v727_v18 = vsel %vm709_vm0, %v1297_v4, 0.0  ;;  %v1018_v59 = vpack.c.bf16 %v711_v25, %v711_v25  ;;  %1306 = vpow2.f32 %v487_v22 }
 0x1c7   :  { %v1034_v23 = vpack.c.bf16 %v727_v18, %v727_v18  ;;  %v986_v19 = vpack.c.bf16 %v516_v7, %v516_v7  ;;  %1308 = vpow2.f32 %v455_v56  ;;  %v396_v17 = vpop.xlane.xlu0 %395 }
 0x1c8   :  { %v1299_v62 = vpop.eup %1298  ;;  %v1002_v20 = vpack.c.bf16 %v532_v16, %v532_v16  ;;  %871 = vst [vmem:[#allocation7 + $0xc] sm:$0xf] %v1018_v59  ;;  %v398_v63 = vpop.xlane.xlu1 %397  ;;  %v459_v26 = vmul.f32 1.442695, %v396_v17 }
 0x1c9   :  { %v1301_v0 = vpop.eup %1300  ;;  %887 = vst [vmem:[#allocation7 + $0x8c] sm:$0xf] %v1034_v23  ;;  %676 = vst [vmem:[#allocation7 + $0x8] sm:$0xf] %v986_v19  ;;  %v515_v1 = vmul.f32 %v1299_v62, %v1485_v9  ;;  %v710_v27 = vsel %vm709_vm0, %v1299_v62, 0.0 }
 0x1ca   :  { %v461_v21 = vmul.f32 1.442695, %v398_v63  ;;  %692 = vst [vmem:[#allocation7 + $0x88] sm:$0xf] %v1002_v20  ;;  %v1017_v24 = vpack.c.bf16 %v710_v27, %v710_v27  ;;  %v518_v5 = vmul.f32 %v1301_v0, %v1502_v30  ;;  %v713_v12 = vsel %vm709_vm0, %v1301_v0, 0.0 }
 0x1cb   :  { %1310 = vpow2.f32 %v459_v26  ;;  %v985_v57 = vpack.c.bf16 %v515_v1, %v515_v1  ;;  %v1020_v60 = vpack.c.bf16 %v713_v12, %v713_v12  ;;  %v428_v13 = vpop.xlane.xlu0 %427 }
 0x1cc   :  { %1312 = vpow2.f32 %v461_v21  ;;  %v1303_v8 = vpop.eup %1302  ;;  %870 = vst [vmem:[#allocation7 + $0x4] sm:$0xf] %v1017_v24  ;;  %v988_v61 = vpack.c.bf16 %v518_v5, %v518_v5  ;;  %v430_v9 = vpop.xlane.xlu1 %429  ;;  %v491_v14 = vmul.f32 1.442695, %v428_v13 }
 0x1cd   :  { %v1305_v2 = vpop.eup %1304  ;;  %675 = vst [vmem:[#allocation7] sm:$0xf] %v985_v57  ;;  %873 = vst [vmem:[#allocation7 + $0x1c] sm:$0xf] %v1020_v60  ;;  %v531_v15 = vmul.f32 %v1303_v8, %v1487_v10  ;;  %v726_v30 = vsel %vm709_vm0, %v1303_v8, 0.0 }
 0x1ce   :  { %v493_v3 = vmul.f32 1.442695, %v430_v9  ;;  %678 = vst [vmem:[#allocation7 + $0x18] sm:$0xf] %v988_v61  ;;  %v1033_v6 = vpack.c.bf16 %v726_v30, %v726_v30  ;;  %v534_v22 = vmul.f32 %v1305_v2, %v1505_v31  ;;  %v729_v11 = vsel %vm709_vm0, %v1305_v2, 0.0 }
 0x1cf   :  { %1314 = vpow2.f32 %v491_v14  ;;  %v1001_v4 = vpack.c.bf16 %v531_v15, %v531_v15  ;;  %v1036_v7 = vpack.c.bf16 %v729_v11, %v729_v11  ;;  %v400_v25 = vpop.xlane.xlu0 %399 }
 0x1d0   :  { %1316 = vpow2.f32 %v493_v3  ;;  %v1307_v56 = vpop.eup %1306  ;;  %886 = vst [vmem:[#allocation7 + $0x84] sm:$0xf] %v1033_v6  ;;  %v1004_v16 = vpack.c.bf16 %v534_v22, %v534_v22  ;;  %v402_v10 = vpop.xlane.xlu1 %401  ;;  %v463_v18 = vmul.f32 1.442695, %v400_v25 }
 0x1d1   :  { %v1309_v59 = vpop.eup %1308  ;;  %691 = vst [vmem:[#allocation7 + $0x80] sm:$0xf] %v1001_v4  ;;  %889 = vst [vmem:[#allocation7 + $0x9c] sm:$0xf] %v1036_v7  ;;  %v533_v23 = vmul.f32 %v1307_v56, %v1497_v29  ;;  %v728_v31 = vsel %vm709_vm0, %v1307_v56, 0.0 }
 0x1d2   :  { %v465_v19 = vmul.f32 1.442695, %v402_v10  ;;  %694 = vst [vmem:[#allocation7 + $0x98] sm:$0xf] %v1004_v16  ;;  %v1035_v17 = vpack.c.bf16 %v728_v31, %v728_v31  ;;  %v517_v62 = vmul.f32 %v1309_v59, %v1495_v28  ;;  %v712_v20 = vsel %vm709_vm0, %v1309_v59, 0.0 }
 0x1d3   :  { %1318 = vpow2.f32 %v463_v18  ;;  %v1003_v63 = vpack.c.bf16 %v533_v23, %v533_v23  ;;  %v1019_v26 = vpack.c.bf16 %v712_v20, %v712_v20  ;;  %v432_v0 = vpop.xlane.xlu0 %431 }
 0x1d4   :  { %1320 = vpow2.f32 %v465_v19  ;;  %888 = vst [vmem:[#allocation7 + $0x94] sm:$0xf] %v1035_v17  ;;  %v987_v27 = vpack.c.bf16 %v517_v62, %v517_v62  ;;  %v434_v29 = vpop.xlane.xlu1 %433  ;;  %v495_v21 = vmul.f32 1.442695, %v432_v0 }
 0x1d5   :  { %v1311_v1 = vpop.eup %1310  ;;  %693 = vst [vmem:[#allocation7 + $0x90] sm:$0xf] %v1003_v63  ;;  %872 = vst [vmem:[#allocation7 + $0x14] sm:$0xf] %v1019_v26  ;;  %v497_v12 = vmul.f32 1.442695, %v434_v29 }
 0x1d6   :  { %v1313_v24 = vpop.eup %1312  ;;  %v519_v5 = vmul.f32 %v1311_v1, %v1507_v32  ;;  %v714_v28 = vsel %vm709_vm0, %v1311_v1, 0.0  ;;  %677 = vst [vmem:[#allocation7 + $0x10] sm:$0xf] %v987_v27  ;;  %1322 = vpow2.f32 %v495_v21 }
 0x1d7   :  { %v520_v57 = vmul.f32 %v1313_v24, %v1514_v34  ;;  %v715_v60 = vsel %vm709_vm0, %v1313_v24, 0.0  ;;  %v1021_v13 = vpack.c.bf16 %v714_v28, %v714_v28  ;;  %1324 = vpow2.f32 %v497_v12  ;;  %v404_v9 = vpop.xlane.xlu0 %403 }
 0x1d8   :  { %v1022_v8 = vpack.c.bf16 %v715_v60, %v715_v60  ;;  %v989_v61 = vpack.c.bf16 %v519_v5, %v519_v5  ;;  %v406_v32 = vpop.xlane.xlu1 %405  ;;  %v467_v15 = vmul.f32 1.442695, %v404_v9 }
 0x1d9   :  { %v1315_v14 = vpop.eup %1314  ;;  %v990_v2 = vpack.c.bf16 %v520_v57, %v520_v57  ;;  %874 = vst [vmem:[#allocation7 + $0x24] sm:$0xf] %v1021_v13  ;;  %v469_v6 = vmul.f32 1.442695, %v406_v32 }
 0x1da   :  { %v1317_v30 = vpop.eup %1316  ;;  %875 = vst [vmem:[#allocation7 + $0x2c] sm:$0xf] %v1022_v8  ;;  %679 = vst [vmem:[#allocation7 + $0x20] sm:$0xf] %v989_v61  ;;  %v535_v3 = vmul.f32 %v1315_v14, %v1509_v33  ;;  %v730_v34 = vsel %vm709_vm0, %v1315_v14, 0.0  ;;  %1326 = vpow2.f32 %v467_v15 }
 0x1db   :  { %680 = vst [vmem:[#allocation7 + $0x28] sm:$0xf] %v990_v2  ;;  %v536_v22 = vmul.f32 %v1317_v30, %v1517_v35  ;;  %v731_v11 = vsel %vm709_vm0, %v1317_v30, 0.0  ;;  %v1037_v4 = vpack.c.bf16 %v730_v34, %v730_v34  ;;  %1328 = vpow2.f32 %v469_v6  ;;  %v436_v56 = vpop.xlane.xlu0 %435 }
 0x1dc   :  { %v1038_v7 = vpack.c.bf16 %v731_v11, %v731_v11  ;;  %v1005_v25 = vpack.c.bf16 %v535_v3, %v535_v3  ;;  %v438_v33 = vpop.xlane.xlu1 %437  ;;  %v499_v18 = vmul.f32 1.442695, %v436_v56 }
 0x1dd   :  { %v1319_v16 = vpop.eup %1318  ;;  %v1006_v10 = vpack.c.bf16 %v536_v22, %v536_v22  ;;  %890 = vst [vmem:[#allocation7 + $0xa4] sm:$0xf] %v1037_v4  ;;  %v501_v31 = vmul.f32 1.442695, %v438_v33 }
 0x1de   :  { %v1321_v59 = vpop.eup %1320  ;;  %891 = vst [vmem:[#allocation7 + $0xac] sm:$0xf] %v1038_v7  ;;  %695 = vst [vmem:[#allocation7 + $0xa0] sm:$0xf] %v1005_v25  ;;  %v521_v23 = vmul.f32 %v1319_v16, %v1519_v36  ;;  %v716_v35 = vsel %vm709_vm0, %v1319_v16, 0.0  ;;  %1330 = vpow2.f32 %v499_v18 }
 0x1df   :  { %696 = vst [vmem:[#allocation7 + $0xa8] sm:$0xf] %v1006_v10  ;;  %v522_v19 = vmul.f32 %v1321_v59, %v1526_v38  ;;  %v717_v17 = vsel %vm709_vm0, %v1321_v59, 0.0  ;;  %v1023_v62 = vpack.c.bf16 %v716_v35, %v716_v35  ;;  %1332 = vpow2.f32 %v501_v31  ;;  %v408_v26 = vpop.xlane.xlu0 %407 }
 0x1e0   :  { %v1024_v20 = vpack.c.bf16 %v717_v17, %v717_v17  ;;  %v991_v63 = vpack.c.bf16 %v521_v23, %v521_v23  ;;  %v1323_v0 = vpop.eup %1322  ;;  %v410_v36 = vpop.xlane.xlu1 %409  ;;  %v471_v27 = vmul.f32 1.442695, %v408_v26 }
 0x1e1   :  { %v992_v1 = vpack.c.bf16 %v522_v19, %v522_v19  ;;  %876 = vst [vmem:[#allocation7 + $0x34] sm:$0xf] %v1023_v62  ;;  %v1325_v29 = vpop.eup %1324  ;;  %v537_v21 = vmul.f32 %v1323_v0, %v1521_v37  ;;  %v732_v38 = vsel %vm709_vm0, %v1323_v0, 0.0  ;;  %v473_v24 = vmul.f32 1.442695, %v410_v36 }
 0x1e2   :  { %877 = vst [vmem:[#allocation7 + $0x3c] sm:$0xf] %v1024_v20  ;;  %681 = vst [vmem:[#allocation7 + $0x30] sm:$0xf] %v991_v63  ;;  %v538_v5 = vmul.f32 %v1325_v29, %v1529_v39  ;;  %v733_v28 = vsel %vm709_vm0, %v1325_v29, 0.0  ;;  %v1039_v12 = vpack.c.bf16 %v732_v38, %v732_v38  ;;  %1334 = vpow2.f32 %v471_v27 }
 0x1e3   :  { %682 = vst [vmem:[#allocation7 + $0x38] sm:$0xf] %v992_v1  ;;  %v1040_v57 = vpack.c.bf16 %v733_v28, %v733_v28  ;;  %v1007_v60 = vpack.c.bf16 %v537_v21, %v537_v21  ;;  %1336 = vpow2.f32 %v473_v24  ;;  %v440_v13 = vpop.xlane.xlu0 %439 }
 0x1e4   :  { %v1327_v8 = vpop.eup %1326  ;;  %v1008_v61 = vpack.c.bf16 %v538_v5, %v538_v5  ;;  %892 = vst [vmem:[#allocation7 + $0xb4] sm:$0xf] %v1039_v12  ;;  %v442_v37 = vpop.xlane.xlu1 %441  ;;  %v503_v9 = vmul.f32 1.442695, %v440_v13 }
 0x1e5   :  { %v1329_v14 = vpop.eup %1328  ;;  %893 = vst [vmem:[#allocation7 + $0xbc] sm:$0xf] %v1040_v57  ;;  %697 = vst [vmem:[#allocation7 + $0xb0] sm:$0xf] %v1007_v60  ;;  %v523_v2 = vmul.f32 %v1327_v8, %v1531_v40  ;;  %v718_v39 = vsel %vm709_vm0, %v1327_v8, 0.0 }
 0x1e6   :  { %v505_v32 = vmul.f32 1.442695, %v442_v37  ;;  %698 = vst [vmem:[#allocation7 + $0xb8] sm:$0xf] %v1008_v61  ;;  %v524_v15 = vmul.f32 %v1329_v14, %v1538_v42  ;;  %v719_v30 = vsel %vm709_vm0, %v1329_v14, 0.0  ;;  %v1025_v3 = vpack.c.bf16 %v718_v39, %v718_v39 }
 0x1e7   :  { %1338 = vpow2.f32 %v503_v9  ;;  %v1026_v34 = vpack.c.bf16 %v719_v30, %v719_v30  ;;  %v993_v6 = vpack.c.bf16 %v523_v2, %v523_v2  ;;  %v412_v22 = vpop.xlane.xlu0 %411 }
 0x1e8   :  { %1340 = vpow2.f32 %v505_v32  ;;  %v1331_v11 = vpop.eup %1330  ;;  %v994_v4 = vpack.c.bf16 %v524_v15, %v524_v15  ;;  %878 = vst [vmem:[#allocation7 + $0x44] sm:$0xf] %v1025_v3  ;;  %v414_v40 = vpop.xlane.xlu1 %413  ;;  %v475_v7 = vmul.f32 1.442695, %v412_v22 }
 0x1e9   :  { %v1333_v25 = vpop.eup %1332  ;;  %879 = vst [vmem:[#allocation7 + $0x4c] sm:$0xf] %v1026_v34  ;;  %683 = vst [vmem:[#allocation7 + $0x40] sm:$0xf] %v993_v6  ;;  %v539_v56 = vmul.f32 %v1331_v11, %v1533_v41  ;;  %v734_v42 = vsel %vm709_vm0, %v1331_v11, 0.0 }
 0x1ea   :  { %v477_v16 = vmul.f32 1.442695, %v414_v40  ;;  %684 = vst [vmem:[#allocation7 + $0x48] sm:$0xf] %v994_v4  ;;  %v540_v10 = vmul.f32 %v1333_v25, %v1541_v43  ;;  %v735_v33 = vsel %vm709_vm0, %v1333_v25, 0.0  ;;  %v1041_v18 = vpack.c.bf16 %v734_v42, %v734_v42 }
 0x1eb   :  { %1342 = vpow2.f32 %v475_v7  ;;  %v1042_v59 = vpack.c.bf16 %v735_v33, %v735_v33  ;;  %v1009_v23 = vpack.c.bf16 %v539_v56, %v539_v56  ;;  %v444_v35 = vpop.xlane.xlu0 %443 }
 0x1ec   :  { %1344 = vpow2.f32 %v477_v16  ;;  %v1335_v31 = vpop.eup %1334  ;;  %v1010_v19 = vpack.c.bf16 %v540_v10, %v540_v10  ;;  %894 = vst [vmem:[#allocation7 + $0xc4] sm:$0xf] %v1041_v18  ;;  %v446_v41 = vpop.xlane.xlu1 %445  ;;  %v507_v17 = vmul.f32 1.442695, %v444_v35 }
 0x1ed   :  { %v1337_v62 = vpop.eup %1336  ;;  %895 = vst [vmem:[#allocation7 + $0xcc] sm:$0xf] %v1042_v59  ;;  %699 = vst [vmem:[#allocation7 + $0xc0] sm:$0xf] %v1009_v23  ;;  %v525_v20 = vmul.f32 %v1335_v31, %v1543_v44  ;;  %v720_v43 = vsel %vm709_vm0, %v1335_v31, 0.0 }
 0x1ee   :  { %v509_v63 = vmul.f32 1.442695, %v446_v41  ;;  %700 = vst [vmem:[#allocation7 + $0xc8] sm:$0xf] %v1010_v19  ;;  %v526_v26 = vmul.f32 %v1337_v62, %v1550_v46  ;;  %v721_v0 = vsel %vm709_vm0, %v1337_v62, 0.0  ;;  %v1027_v1 = vpack.c.bf16 %v720_v43, %v720_v43 }
 0x1ef   :  { %1346 = vpow2.f32 %v507_v17  ;;  %v1028_v36 = vpack.c.bf16 %v721_v0, %v721_v0  ;;  %v995_v27 = vpack.c.bf16 %v525_v20, %v525_v20  ;;  %v416_v29 = vpop.xlane.xlu0 %415 }
 0x1f0   :  { %1348 = vpow2.f32 %v509_v63  ;;  %v996_v38 = vpack.c.bf16 %v526_v26, %v526_v26  ;;  %880 = vst [vmem:[#allocation7 + $0x54] sm:$0xf] %v1027_v1  ;;  %v418_v44 = vpop.xlane.xlu1 %417  ;;  %v479_v24 = vmul.f32 1.442695, %v416_v29 }
 0x1f1   :  { %v1339_v21 = vpop.eup %1338  ;;  %881 = vst [vmem:[#allocation7 + $0x5c] sm:$0xf] %v1028_v36  ;;  %685 = vst [vmem:[#allocation7 + $0x50] sm:$0xf] %v995_v27  ;;  %v481_v12 = vmul.f32 1.442695, %v418_v44 }
 0x1f2   :  { %v1341_v5 = vpop.eup %1340  ;;  %v541_v28 = vmul.f32 %v1339_v21, %v1545_v45  ;;  %v736_v46 = vsel %vm709_vm0, %v1339_v21, 0.0  ;;  %686 = vst [vmem:[#allocation7 + $0x58] sm:$0xf] %v996_v38  ;;  %1350 = vpow2.f32 %v479_v24 }
 0x1f3   :  { %v542_v57 = vmul.f32 %v1341_v5, %v1553_v47  ;;  %v737_v60 = vsel %vm709_vm0, %v1341_v5, 0.0  ;;  %v1043_v13 = vpack.c.bf16 %v736_v46, %v736_v46  ;;  %1352 = vpow2.f32 %v481_v12  ;;  %v448_v37 = vpop.xlane.xlu0 %447 }
 0x1f4   :  { %v1044_v8 = vpack.c.bf16 %v737_v60, %v737_v60  ;;  %v1011_v61 = vpack.c.bf16 %v541_v28, %v541_v28  ;;  %v450_v45 = vpop.xlane.xlu1 %449  ;;  %v511_v2 = vmul.f32 1.442695, %v448_v37 }
 0x1f5   :  { %v1343_v9 = vpop.eup %1342  ;;  %v1012_v14 = vpack.c.bf16 %v542_v57, %v542_v57  ;;  %896 = vst [vmem:[#allocation7 + $0xd4] sm:$0xf] %v1043_v13  ;;  %v513_v15 = vmul.f32 1.442695, %v450_v45 }
 0x1f6   :  { %v1345_v39 = vpop.eup %1344  ;;  %897 = vst [vmem:[#allocation7 + $0xdc] sm:$0xf] %v1044_v8  ;;  %701 = vst [vmem:[#allocation7 + $0xd0] sm:$0xf] %v1011_v61  ;;  %v527_v32 = vmul.f32 %v1343_v9, %v1555_v48  ;;  %v722_v47 = vsel %vm709_vm0, %v1343_v9, 0.0  ;;  %1354 = vpow2.f32 %v511_v2 }
 0x1f7   :  { %702 = vst [vmem:[#allocation7 + $0xd8] sm:$0xf] %v1012_v14  ;;  %v528_v30 = vmul.f32 %v1345_v39, %v1562_v50  ;;  %v723_v3 = vsel %vm709_vm0, %v1345_v39, 0.0  ;;  %v1029_v34 = vpack.c.bf16 %v722_v47, %v722_v47  ;;  %1356 = vpow2.f32 %v513_v15 }
 0x1f8   :  { %v1030_v6 = vpack.c.bf16 %v723_v3, %v723_v3  ;;  %v997_v22 = vpack.c.bf16 %v527_v32, %v527_v32 }
 0x1f9   :  { %v1347_v11 = vpop.eup %1346  ;;  %v998_v4 = vpack.c.bf16 %v528_v30, %v528_v30  ;;  %882 = vst [vmem:[#allocation7 + $0x64] sm:$0xf] %v1029_v34 }
 0x1fa   :  { %v1349_v40 = vpop.eup %1348  ;;  %883 = vst [vmem:[#allocation7 + $0x6c] sm:$0xf] %v1030_v6  ;;  %687 = vst [vmem:[#allocation7 + $0x60] sm:$0xf] %v997_v22  ;;  %v543_v48 = vmul.f32 %v1347_v11, %v1557_v49  ;;  %v738_v7 = vsel %vm709_vm0, %v1347_v11, 0.0 }
 0x1fb   :  { %688 = vst [vmem:[#allocation7 + $0x68] sm:$0xf] %v998_v4  ;;  %v544_v50 = vmul.f32 %v1349_v40, %v1565_v51  ;;  %v739_v25 = vsel %vm709_vm0, %v1349_v40, 0.0  ;;  %v1045_v56 = vpack.c.bf16 %v738_v7, %v738_v7 }
 0x1fc   :  { %v1046_v42 = vpack.c.bf16 %v739_v25, %v739_v25  ;;  %v1013_v16 = vpack.c.bf16 %v543_v48, %v543_v48  ;;  %v1351_v10 = vpop.eup %1350 }
 0x1fd   :  { %v1014_v33 = vpack.c.bf16 %v544_v50, %v544_v50  ;;  %898 = vst [vmem:[#allocation7 + $0xe4] sm:$0xf] %v1045_v56  ;;  %v1353_v18 = vpop.eup %1352  ;;  %v529_v49 = vmul.f32 %v1351_v10, %v1567_v52  ;;  %v724_v59 = vsel %vm709_vm0, %v1351_v10, 0.0 }
 0x1fe   :  { %899 = vst [vmem:[#allocation7 + $0xec] sm:$0xf] %v1046_v42  ;;  %703 = vst [vmem:[#allocation7 + $0xe0] sm:$0xf] %v1013_v16  ;;  %v530_v51 = vmul.f32 %v1353_v18, %v1574_v54  ;;  %v725_v23 = vsel %vm709_vm0, %v1353_v18, 0.0  ;;  %v1031_v35 = vpack.c.bf16 %v724_v59, %v724_v59 }
 0x1ff   :  { %704 = vst [vmem:[#allocation7 + $0xe8] sm:$0xf] %v1014_v33  ;;  %v1032_v31 = vpack.c.bf16 %v725_v23, %v725_v23  ;;  %v999_v19 = vpack.c.bf16 %v529_v49, %v529_v49 }
 0x200   :  { %v1355_v41 = vpop.eup %1354  ;;  %v1000_v17 = vpack.c.bf16 %v530_v51, %v530_v51  ;;  %884 = vst [vmem:[#allocation7 + $0x74] sm:$0xf] %v1031_v35 }
 0x201   :  { %v1357_v62 = vpop.eup %1356  ;;  %885 = vst [vmem:[#allocation7 + $0x7c] sm:$0xf] %v1032_v31  ;;  %689 = vst [vmem:[#allocation7 + $0x70] sm:$0xf] %v999_v19  ;;  %v545_v52 = vmul.f32 %v1355_v41, %v1569_v53  ;;  %v740_v20 = vsel %vm709_vm0, %v1355_v41, 0.0 }
 0x202   :  { %690 = vst [vmem:[#allocation7 + $0x78] sm:$0xf] %v1000_v17  ;;  %v546_v54 = vmul.f32 %v1357_v62, %v1577_v55  ;;  %v741_v43 = vsel %vm709_vm0, %v1357_v62, 0.0  ;;  %v1047_v63 = vpack.c.bf16 %v740_v20, %v740_v20 }
 0x203   :  { %v1048_v26 = vpack.c.bf16 %v741_v43, %v741_v43  ;;  %v1015_v0 = vpack.c.bf16 %v545_v52, %v545_v52 }
 0x204   :  { %v1016_v1 = vpack.c.bf16 %v546_v54, %v546_v54  ;;  %900 = vst [vmem:[#allocation7 + $0xf4] sm:$0xf] %v1047_v63 }
 0x205   :  { %901 = vst [vmem:[#allocation7 + $0xfc] sm:$0xf] %v1048_v26  ;;  %705 = vst [vmem:[#allocation7 + $0xf0] sm:$0xf] %v1015_v0 }
 0x206   :  { %706 = vst [vmem:[#allocation7 + $0xf8] sm:$0xf] %v1016_v1 }
 0x207   :  { %1413 = shalt.err (!%p1410_p6)
}
 0x208   :  { %s1414_s15 = scalar_lea.hbm %s1735_s3, 4096 }
 0x209   :  { %p1415_p7 = scmp.ne.s32.totalorder %s1735_s3, %s1414_s15  ;;  %p1418_p8 = scmp.lt.u32.totalorder %s1414_s15, %s1735_s3 }
 0x20b   :  { %p1420_p9 = pnand %p1418_p8, %p1415_p7 }
 0x20d   :  { %1423 = shalt.err (!%p1420_p9)
}
 0x20e   :  { %913 = dma.vmem_to_hbm [thread:$0]  %s908_s11, 4096, %s1735_s3, [#allocation4], %s1431_s22, %s1431_s22, %s1432_s23  }
 0x20f   :  { %1428 = dma.done.wait [#allocation4], 4096  }
 0x210   :  { %1429 = vsyncadd [#allocation4], 4294963200 }
 0x211   :  { %917 = vsyncpa [#allocation3], 1 }
 0x212   :  { %918 = vsyncpa [#allocation6], 1 }
 0x213   :  { %919 = vsyncpa [#allocation4], 1 }

</bundles_post_ra>
